<compile_context>
chip_gen: v5e
topology: v5e:2x2
jax: 0.10.0
libtpu: 0.0.40
codegen_flags: <defaults>
</compile_context>

<pallas_src>
import jax
import jax.numpy as jnp
from jax.experimental import pallas as pl
from jax.experimental.pallas import tpu as pltpu


def _round_up(x, m):
    return ((x + m - 1) // m) * m


def _gather_rows_kernel(idx_ref, table_hbm, out_ref, sem):
    """Gather one output tile of embedding rows via per-row async DMAs.

    idx_ref:   SMEM (n_pad,) int32      -- scalar-prefetched node ids
    table_hbm: ANY/HBM (num_nodes, h_dim) -- never copied wholesale
    out_ref:   VMEM (tile, h_dim)       -- rows DMA'd straight into the block
    sem:       DMA semaphore (1,)       -- shared by all row copies of the tile
    """
    tile = out_ref.shape[0]
    base = pl.program_id(0) * tile

    # Issue all row DMAs for this tile (kept in flight on one shared sem).
    @pl.loop(0, tile)
    def _issue(r):
        row = idx_ref[base + r]
        pltpu.make_async_copy(table_hbm.at[row], out_ref.at[r], sem.at[0]).start()

    # Drain: one wait per issued copy (identical byte counts, shared sem).
    @pl.loop(0, tile)
    def _drain(r):
        row = idx_ref[base + r]
        pltpu.make_async_copy(table_hbm.at[row], out_ref.at[r], sem.at[0]).wait()


def embedding_layer_forward(g, h, r, norm, table, *, tile_rows=256):
    """Pallas equivalent of EmbeddingLayer.forward; g, r, norm are unused."""
    del g, r, norm

    squeezed = jnp.squeeze(jnp.asarray(h))              # h.squeeze()
    lead_shape = squeezed.shape
    indices = squeezed.reshape(-1).astype(jnp.int32)
    n = int(indices.shape[0])
    num_nodes, h_dim = (int(d) for d in table.shape)

    if n == 0:
        return jnp.zeros(lead_shape + (h_dim,), table.dtype)

    # Safety: a bad id must never become an out-of-bounds HBM DMA.
    # (nn.Embedding would raise; here it is clamped -- document upstream.)
    indices = jnp.clip(indices, 0, num_nodes - 1)

    row_bytes = h_dim * jnp.dtype(table.dtype).itemsize
    # Big tiles amortize the ~0.35us/step overhead, but keep the
    # double-buffered output tile well inside default scoped VMEM (<= ~8 MiB).
    max_tile_by_vmem = max(8, (((4 << 20) // max(row_bytes, 1)) // 8) * 8)
    tile = max(8, min(tile_rows, max_tile_by_vmem, _round_up(n, 8)))
    n_pad = _round_up(n, tile)
    if n_pad != n:
        indices = jnp.pad(indices, (0, n_pad - n))      # padded rows gather row 0

    cost = pl.CostEstimate(
        flops=0,
        transcendentals=0,
        bytes_accessed=n_pad * 4 + 2 * n_pad * row_bytes,   # idx + rows in + out
    )

    grid_spec = pltpu.PrefetchScalarGridSpec(
        num_scalar_prefetch=1,                # indices -> SMEM
        grid=(n_pad // tile,),
        in_specs=[pl.BlockSpec(memory_space=pl.ANY)],   # table stays in HBM
        out_specs=pl.BlockSpec((tile, h_dim), lambda i, idx: (i, 0)),
        scratch_shapes=[pltpu.SemaphoreType.DMA((1,))],
    )

    out = pl.pallas_call(
        _gather_rows_kernel,
        out_shape=jax.ShapeDtypeStruct((n_pad, h_dim), table.dtype),
        grid_spec=grid_spec,
        compiler_params=pltpu.CompilerParams(
            dimension_semantics=("arbitrary",)),
        cost_estimate=cost,
    )(indices, table)

    if n_pad != n:
        out = out[:n]
    return out.reshape(lead_shape + (h_dim,))


if __name__ == "__main__":
    key = jax.random.PRNGKey(0)
    k_table, k_idx = jax.random.split(key)

    num_nodes = 64
    h_dim = 32
    n = 16

    # nn.Embedding default init: weight ~ N(0, 1)
    table = jax.random.normal(k_table, (num_nodes, h_dim), dtype=jnp.float32)

    # h: node-id tensor with a trailing singleton dim (as in RGCN-style code)
    h = jax.random.randint(k_idx, (n, 1), 0, num_nodes, dtype=jnp.int32)

    out = embedding_layer_forward(None, h, None, None, table)
    out = jax.block_until_ready(out)

    # Reference check: a DMA gather is bit-exact vs jnp.take.
    ref = jnp.take(table, jnp.squeeze(h), axis=0)
    assert out.shape == (n, h_dim)
    assert jnp.array_equal(out, ref), "mismatch vs reference gather"

    print("KERNEL_OK")
</pallas_src>

<mosaic_0001>
module attributes {stable_mosaic.version = 11 : i64} {
  func.func @_gather_rows_kernel(%arg0: i32, %arg1: memref<16xi32, #tpu.memory_space<smem>>, %arg2: memref<64x32xf32, #tpu.memory_space<any>>, %arg3: memref<16x32xf32, #tpu.memory_space<vmem>>, %arg4: memref<1x!tpu.dma_semaphore, #tpu.memory_space<semaphore_mem>>) attributes {dimension_semantics = [#tpu.dimension_semantics<arbitrary>], iteration_bounds = array<i64: 1>, scalar_prefetch = 1 : i64, scratch_operands = 1 : i64, tpu.core_type = #tpu.core_type<tc>, window_params = [{}, {transform_indices = @transform_1, window_bounds = array<i64: 16, 32>}]} {
    %c16_i32 = arith.constant 16 : i32
    %0 = arith.muli %arg0, %c16_i32 : i32
    %c0_i32 = arith.constant 0 : i32
    %c16_i32_0 = arith.constant 16 : i32
    %1 = arith.addi %c0_i32, %c16_i32_0 : i32
    %c1_i32 = arith.constant 1 : i32
    scf.for %arg5 = %c0_i32 to %1 step %c1_i32  : i32 {
      %c1_i32_6 = arith.constant 1 : i32
      %3 = arith.muli %arg5, %c1_i32_6 : i32
      %c0_i32_7 = arith.constant 0 : i32
      %4 = arith.addi %c0_i32_7, %3 : i32
      %5 = arith.addi %0, %4 : i32
      %6 = arith.index_cast %5 : i32 to index
      %7 = memref.load %arg1[%6] : memref<16xi32, #tpu.memory_space<smem>>
      %c0_i32_8 = arith.constant 0 : i32
      %c0_i32_9 = arith.constant 0 : i32
      %8 = tpu.memref_slice %arg2[%7, %c0_i32_9] : memref<64x32xf32, #tpu.memory_space<any>> -> memref<1x32xf32, #tpu.memory_space<any>>
      %9 = tpu.memref_squeeze %8 : memref<1x32xf32, #tpu.memory_space<any>> -> memref<32xf32, #tpu.memory_space<any>>
      %c0_i32_10 = arith.constant 0 : i32
      %10 = tpu.memref_slice %arg3[%4, %c0_i32_10] : memref<16x32xf32, #tpu.memory_space<vmem>> -> memref<1x32xf32, #tpu.memory_space<vmem>>
      %11 = tpu.memref_squeeze %10 : memref<1x32xf32, #tpu.memory_space<vmem>> -> memref<32xf32, #tpu.memory_space<vmem>>
      %12 = tpu.memref_slice %arg4[%c0_i32_8] : memref<1x!tpu.dma_semaphore, #tpu.memory_space<semaphore_mem>> -> memref<1x!tpu.dma_semaphore, #tpu.memory_space<semaphore_mem>>
      %13 = tpu.memref_squeeze %12 : memref<1x!tpu.dma_semaphore, #tpu.memory_space<semaphore_mem>> -> memref<!tpu.dma_semaphore, #tpu.memory_space<semaphore_mem>>
      tpu.enqueue_dma source(%9 : memref<32xf32, #tpu.memory_space<any>>) target(%11 : memref<32xf32, #tpu.memory_space<vmem>>) target_semaphore(%13 : memref<!tpu.dma_semaphore, #tpu.memory_space<semaphore_mem>>)
    }
    %c16_i32_1 = arith.constant 16 : i32
    %c0_i32_2 = arith.constant 0 : i32
    %c16_i32_3 = arith.constant 16 : i32
    %2 = arith.addi %c0_i32_2, %c16_i32_3 : i32
    %c1_i32_4 = arith.constant 1 : i32
    scf.for %arg5 = %c0_i32_2 to %2 step %c1_i32_4  : i32 {
      %c1_i32_6 = arith.constant 1 : i32
      %3 = arith.muli %arg5, %c1_i32_6 : i32
      %c0_i32_7 = arith.constant 0 : i32
      %4 = arith.addi %c0_i32_7, %3 : i32
      %5 = arith.addi %0, %4 : i32
      %6 = arith.index_cast %5 : i32 to index
      %7 = memref.load %arg1[%6] : memref<16xi32, #tpu.memory_space<smem>>
      %c0_i32_8 = arith.constant 0 : i32
      %c0_i32_9 = arith.constant 0 : i32
      %8 = tpu.memref_slice %arg2[%7, %c0_i32_9] : memref<64x32xf32, #tpu.memory_space<any>> -> memref<1x32xf32, #tpu.memory_space<any>>
      %9 = tpu.memref_squeeze %8 : memref<1x32xf32, #tpu.memory_space<any>> -> memref<32xf32, #tpu.memory_space<any>>
      %c0_i32_10 = arith.constant 0 : i32
      %10 = tpu.memref_slice %arg3[%4, %c0_i32_10] : memref<16x32xf32, #tpu.memory_space<vmem>> -> memref<1x32xf32, #tpu.memory_space<vmem>>
      %11 = tpu.memref_squeeze %10 : memref<1x32xf32, #tpu.memory_space<vmem>> -> memref<32xf32, #tpu.memory_space<vmem>>
      %12 = tpu.memref_slice %arg4[%c0_i32_8] : memref<1x!tpu.dma_semaphore, #tpu.memory_space<semaphore_mem>> -> memref<1x!tpu.dma_semaphore, #tpu.memory_space<semaphore_mem>>
      %13 = tpu.memref_squeeze %12 : memref<1x!tpu.dma_semaphore, #tpu.memory_space<semaphore_mem>> -> memref<!tpu.dma_semaphore, #tpu.memory_space<semaphore_mem>>
      tpu.wait_dma2 semaphore(%13 : memref<!tpu.dma_semaphore, #tpu.memory_space<semaphore_mem>>) src(%9 : memref<32xf32, #tpu.memory_space<any>>) dst(%11 : memref<32xf32, #tpu.memory_space<vmem>>)
    }
    %c16_i32_5 = arith.constant 16 : i32
    return
  }
  func.func @transform_1(%arg0: i32, %arg1: memref<16xi32, #tpu.memory_space<smem>>) -> (i32, i32) {
    %c0_i32 = arith.constant 0 : i32
    %c0_i32_0 = arith.constant 0 : i32
    return %arg0, %c0_i32 : i32, i32
  }
}

</mosaic_0001>

<bundles_post_ra>
// kernel: tpu_custom_call.1
= control target key start
LH: loop header
LB: loop body
LE: loop exit
PB: predicated region body
PF: predicated region fallthrough
CT: control target
= control target key end

     0   :  { %s190_s12 = smov [#allocation4]   ;;  %s218_s0 = inlined_call_operand.vmem [shape: s32[16], index: 0, kind: input, shape index: {}]   ;;  %s219_s1 = inlined_call_operand.vmem [shape: f32[64,32], index: 1, kind: input, shape index: {}]   ;;  %s220_s2 = inlined_call_operand.hbm [shape: f32[16,32], index: 2, kind: output, shape index: {}]  }
   0x1   :  { %s8_s11 = sshll.u32 %s218_s0, 4  ;;  %s9_s11 = int_to_ptr.vmem [resolvable:$true] %s8_s11 }
   0x2   :  { %11 = dma.vmem_to_smem %s9_s11, 16, %s190_s12, [#allocation3] }
   0x3   :  { %176 = dma.done.wait [#allocation3], 16 }
   0x4   :  { %177 = vsyncadd [#allocation3], 4294967280 }
   0x5   :  { %14 = sfence }
   0x6   :  { %15 = vsyncpa [#allocation6], 0  ;;  %s182_s13 = smov 0  }
   0x7 LB: > { %s24_s14 = sld [smem:[#allocation4 + %s184_s13]]  ;;  %s26_s18 = scalar_lea.vmem [#allocation5], %s184_s13  ;;  %s184_s13 = sphi %s182_s13, %s22_s13  }
   0xd   : > { %s25_s17 = scalar_lea.vmem %s219_s1, %s24_s14 }
   0xe   : > { %v41_v0 = vld [vmem:[%s25_s17] sm:$0x1] }
   0xf   : > { %42 = vst [vmem:[%s26_s18] sm:$0x1] %v41_v0 }
  0x10   : > { %60 = vsyncadd [#allocation2], 16  ;;  %s22_s13 = sadd.s32 1, %s184_s13  }
  0x11   : > { %p19_p0 = scmp.ge.s32.totalorder %s22_s13, 16  }
  0x12   :  { %s186_s0 = smov (%p19_p0), 0  }
  0x13   :  { %21 = sbr.rel (!%p19_p0) target bundleno = 7 (0x7), region = 70 }
  0x18 LB: > { %178 = dma.done.wait [#allocation2], 16  ;;  %s188_s0 = sphi %s186_s0, %s66_s0  }
  0x19   : > { %179 = vsyncadd [#allocation2], 4294967280  ;;  %s66_s0 = sadd.s32 1, %s188_s0  }
  0x1a   : > { %p63_p1 = scmp.ge.s32.totalorder %s66_s0, 16  }
  0x1b   :  { %s77_s21 = sshll.u32 (%p63_p1), %s220_s2, 4  ;;  %s191_s22 = smov (%p63_p1), [#allocation5]   ;;  %s78_s21 = int_to_ptr.hbm [resolvable:$true] %s77_s21 }
  0x1c   :  { %65 = sbr.rel (!%p63_p1) target bundleno = 24 (0x18), region = 81  ;;  %s75_s23 = sshll.u32 (%p63_p1), %s191_s22, 4  ;;  %s76_s23 = int_to_ptr.vmem [resolvable:$true] %s75_s23 }
  0x1d   :  { %s192_s24 = smov (%p63_p1), 128   ;;  %s193_s25 = smov (%p63_p1), 8  }
  0x1e   :  { %83 = dma.vmem_to_hbm [thread:$0]  (%p63_p1), %s76_s23, 256, %s78_s21, [#allocation6], %s192_s24, %s192_s24, %s193_s25  }
  0x21   :  { %180 = dma.done.wait [#allocation6], 256  }
  0x22   :  { %181 = vsyncadd [#allocation6], 4294967040 }
  0x23   :  { %88 = vsyncpa [#allocation6], 1 }
  0x24   :  { %89 = vsyncmov [#allocation2] }
  0x27   :  { %s90_s1 = vpop.sfrf %89 }
  0x28   :  { %p111_p2 = scmp.ne.s32.totalorder %s90_s1, 0 }
  0x2a   :  { %94 = shalt.err (%p111_p2)  }

</bundles_post_ra>
